<compile_context>
chip_gen: v7x
topology: tpu7x:2x2x1
jax: 0.10.0
libtpu: 0.0.40
codegen_flags: <defaults>
</compile_context>

<pallas_src>
import functools

import jax
import jax.numpy as jnp
from jax.experimental import pallas as pl
from jax.experimental.pallas import tpu as pltpu

_HALO = 128          # lanes of look-ahead into the next L tile (>= (K-1)//stride)
_BIAS_LANES = 128    # lane-dense bias tile width


def _round_up(x, m):
    return -(-x // m) * m


def _conv1d_same_kernel(xm_ref, xh_ref, w_ref, b_ref, o_ref, *, k, stride, tile_l):
    # xm_ref: (1, S, Cin_blk, tile_l)     main input window (compute dtype)
    # xh_ref: (1, S, Cin_blk, HALO)       look-ahead into the next tile
    # w_ref:  (1, K, Co_blk, Cin_blk)     per-tap weights (compute dtype)
    # b_ref:  (1, Co_blk, BIAS_LANES)     lane-dense bias (f32)
    # o_ref:  (1, Co_blk, tile_l)         output tile
    win = jnp.concatenate([xm_ref[0], xh_ref[0]], axis=-1)   # (S, Cin, tile_l+HALO)
    co_blk = w_ref.shape[2]
    acc = jnp.zeros((co_blk, tile_l), jnp.float32)
    for kk in range(k):
        r = kk % stride                      # stride phase of this tap
        q = kk // stride                     # shift in output columns
        xk = win[r, :, q:q + tile_l]         # (Cin, tile_l) contiguous slice
        acc = acc + jnp.dot(w_ref[0, kk], xk, preferred_element_type=jnp.float32)
    b_full = b_ref[0]                        # (Co, BIAS_LANES), dense load
    o_ref[0] = (acc + b_full[:, 0:1]).astype(o_ref.dtype)


def _vmem_plan(tile_cap=None):
    """Generation-aware VMEM budget / limit / max L tile."""
    try:
        vmem_cap = int(pltpu.get_tpu_info().vmem_capacity_bytes)
    except Exception:            # no device info / API mismatch -> v7x-safe plan
        vmem_cap = 64 * 2**20
    if vmem_cap >= 100 * 2**20:  # v5e / v6e: 128 MiB physical VMEM
        plan = {"budget": 40 * 2**20, "limit": 64 * 2**20, "tile_cap": 2048}
    else:                        # v7x: 64 MiB per TensorCore (or unknown)
        plan = {"budget": 20 * 2**20, "limit": 40 * 2**20, "tile_cap": 1024}
    if tile_cap is not None:
        plan["tile_cap"] = int(tile_cap)
    return plan


def _pick_tile_l(total_cols, s_used, cin_blk, co_blk, k, in_bytes, out_bytes,
                 budget_bytes, tile_cap):
    """Largest lane-aligned L tile whose working set fits the VMEM budget.

    Accounts for all double-buffered blocks (x main + halo, weight, bias,
    output) plus the in-kernel f32 accumulator and concatenated window.
    """
    def need(t):
        x_main = 2 * s_used * cin_blk * t * in_bytes
        x_halo = 2 * s_used * cin_blk * _HALO * in_bytes
        w = 2 * k * co_blk * cin_blk * in_bytes
        b = 2 * co_blk * _BIAS_LANES * 4
        o = 2 * co_blk * t * out_bytes
        acc = co_blk * t * 4
        win = s_used * cin_blk * (t + _HALO) * in_bytes
        return x_main + x_halo + w + b + o + acc + win

    tile = max(128, min(int(tile_cap), _round_up(max(total_cols, 1), 128)))
    while tile > 128 and need(tile) > budget_bytes:
        tile -= 128
    return tile


def conv1d_pad_same(x, weight, bias, *, stride, groups,
                    compute_dtype=None, max_fused_contraction=512,
                    tile_cap=None):
    """Equivalent of MyConv1dPadSame.forward.

    x:      (N, C_in, L)                float
    weight: (C_out, C_in // groups, K)  float   (PyTorch Conv1d layout)
    bias:   (C_out,)                    float
    compute_dtype: dtype of the MXU operands. bfloat16 is recommended on ALL
        generations (v5e included): the kernel is HBM-bound, bf16 halves the
        streamed bytes, and accumulation is always f32.
    returns (N, C_out, ceil(L / stride)) in x.dtype
    """
    n, c_in, l_in = x.shape
    c_out, ci_per_g, k = weight.shape
    stride = int(stride)
    groups = int(groups)
    assert stride >= 1 and k >= 1
    assert c_in == ci_per_g * groups and c_out % groups == 0
    co_per_g = c_out // groups
    max_q = (k - 1) // stride
    assert max_q <= _HALO, "kernel_size/stride too large for the 128-lane halo"

    compute_dtype = x.dtype if compute_dtype is None else jnp.dtype(compute_dtype)
    out_dtype = x.dtype

    # --- SAME padding, exactly as in the PyTorch module ---
    l_out = (l_in + stride - 1) // stride
    p = max(0, (l_out - 1) * stride + k - l_in)
    pad_left = p // 2

    # --- fused (block-diagonal) vs per-group grid path ---
    fuse = (groups == 1) or (c_in * k <= max_fused_contraction)
    if fuse:
        g_blocks, cin_blk, co_blk = 1, c_in, c_out
    else:
        g_blocks, cin_blk, co_blk = groups, ci_per_g, co_per_g

    s_used = min(stride, k)          # phases r >= K are never read by any tap

    # Per-batch segment length on the packed lane axis:
    #  - >= l_out + max_q so valid outputs never read across a batch boundary,
    #  - segment*stride >= pad_left + l_in so the whole padded input fits.
    lps = max(l_out + max_q, -(-(l_in + pad_left) // stride))
    total_cols = n * lps

    plan = _vmem_plan(tile_cap)
    tile_l = _pick_tile_l(total_cols, s_used, cin_blk, co_blk, k,
                          jnp.dtype(compute_dtype).itemsize,
                          jnp.dtype(out_dtype).itemsize,
                          plan["budget"], plan["tile_cap"])
    l_packed = _round_up(total_cols, tile_l)
    num_tiles = l_packed // tile_l
    l_alloc = l_packed + tile_l      # room for the last tile's halo view

    # --- host re-layout: cast FIRST (bf16 streams half the bytes), then
    #     stride-phase split with batch packed into the lane axis.
    #     x_ph[g, r, c, b*lps + u] == x_pad[b, g*cin_blk + c, u*stride + r]
    lp = lps * stride
    x_c = x.astype(compute_dtype)
    x_pad = jnp.pad(x_c, ((0, 0), (0, 0), (pad_left, lp - l_in - pad_left)))
    x_ph = x_pad.reshape(n, g_blocks, cin_blk, lps, stride)
    x_ph = x_ph.transpose(1, 4, 2, 0, 3)[:, :s_used]       # (g, S, cin, n, lps)
    x_ph = x_ph.reshape(g_blocks, s_used, cin_blk, n * lps)
    x_ph = jnp.pad(x_ph, ((0, 0), (0, 0), (0, 0), (0, l_alloc - total_cols)))

    # --- weights: (C_out, ci_g, K) -> (g_blocks, K, co_blk, cin_blk) ---
    w_g = weight.reshape(groups, co_per_g, ci_per_g, k)
    if fuse:
        eye = jnp.eye(groups, dtype=weight.dtype)
        w_bd = jnp.einsum('gock,gh->gohck', w_g, eye)       # block-diagonal
        w_arr = w_bd.reshape(c_out, c_in, k).transpose(2, 0, 1)[None]
        b2 = bias.reshape(1, c_out)
    else:
        w_arr = w_g.transpose(0, 3, 1, 2)                   # (g, K, co_g, ci_g)
        b2 = bias.reshape(groups, co_per_g)
    w_arr = w_arr.astype(compute_dtype)
    b_arr = jnp.broadcast_to(b2[:, :, None].astype(jnp.float32),
                             (g_blocks, co_blk, _BIAS_LANES))

    kernel = functools.partial(_conv1d_same_kernel, k=k, stride=stride,
                               tile_l=tile_l)
    halo_per_tile = tile_l // _HALO

    if g_blocks == 1:
        # Single large "parallel" L axis -> v7x's two TensorCores can split it.
        grid = (num_tiles,)
        xm_map = lambda j: (0, 0, 0, j)
        xh_map = lambda j: (0, 0, 0, (j + 1) * halo_per_tile)
        w_map = lambda j: (0, 0, 0, 0)
        b_map = lambda j: (0, 0, 0)
        o_map = lambda j: (0, 0, j)
        dims = ("parallel",)
    else:
        # Group axis outermost so weight/bias blocks are revisited (no re-DMA)
        # across the inner L sweep.
        grid = (g_blocks, num_tiles)
        xm_map = lambda g, j: (g, 0, 0, j)
        xh_map = lambda g, j: (g, 0, 0, (j + 1) * halo_per_tile)
        w_map = lambda g, j: (g, 0, 0, 0)
        b_map = lambda g, j: (g, 0, 0)
        o_map = lambda g, j: (g, 0, j)
        dims = ("parallel", "parallel")

    out = pl.pallas_call(
        kernel,
        out_shape=jax.ShapeDtypeStruct((g_blocks, co_blk, l_packed), out_dtype),
        grid=grid,
        in_specs=[
            pl.BlockSpec((1, s_used, cin_blk, tile_l), xm_map),
            pl.BlockSpec((1, s_used, cin_blk, _HALO), xh_map),
            pl.BlockSpec((1, k, co_blk, cin_blk), w_map),
            pl.BlockSpec((1, co_blk, _BIAS_LANES), b_map),
        ],
        out_specs=pl.BlockSpec((1, co_blk, tile_l), o_map),
        compiler_params=pltpu.CompilerParams(
            dimension_semantics=dims,
            vmem_limit_bytes=plan["limit"]),
    )(x_ph, x_ph, w_arr, b_arr)

    # --- unpack the lane-packed output: (g, co_blk, n*lps) -> (n, c_out, l_out)
    out = out[:, :, :total_cols].reshape(g_blocks, co_blk, n, lps)
    out = out.transpose(2, 0, 1, 3).reshape(n, c_out, lps)
    return out[:, :, :l_out]


if __name__ == "__main__":
    key = jax.random.PRNGKey(0)

    def reference(x, weight, bias, stride, groups):
        k = weight.shape[-1]
        l_in = x.shape[-1]
        l_out = (l_in + stride - 1) // stride
        p = max(0, (l_out - 1) * stride + k - l_in)
        x_pad = jnp.pad(x, ((0, 0), (0, 0), (p // 2, p - p // 2)))
        return jax.lax.conv_general_dilated(
            x_pad, weight, window_strides=(stride,), padding="VALID",
            dimension_numbers=("NCH", "OIH", "NCH"),
            feature_group_count=groups) + bias[None, :, None]

    # --- config 1: module config (fused block-diagonal path), f32 ---
    in_c, out_c, ksz, st, gr = 8, 16, 3, 2, 2
    batch, length = 2, 16
    ka, kb, kc, key = jax.random.split(key, 4)
    x = jax.random.normal(ka, (batch, in_c, length), dtype=jnp.float32)
    w = 0.1 * jax.random.normal(kb, (out_c, in_c // gr, ksz), dtype=jnp.float32)
    b = 0.1 * jax.random.normal(kc, (out_c,), dtype=jnp.float32)

    out = jax.block_until_ready(conv1d_pad_same(x, w, b, stride=st, groups=gr))
    ref = reference(x, w, b, st, gr)
    assert out.shape == (batch, out_c, (length + st - 1) // st), out.shape
    assert jnp.allclose(out, ref, atol=1e-5, rtol=1e-5), "f32 fused path mismatch"

    # --- config 1 with bf16 matmul operands (good on v5e/v6e/v7x), f32 accum ---
    out_bf = jax.block_until_ready(conv1d_pad_same(
        x, w, b, stride=st, groups=gr, compute_dtype=jnp.bfloat16))
    assert jnp.allclose(out_bf, ref, atol=5e-2, rtol=5e-2), "bf16 path mismatch"

    # --- config 2: force the per-group grid-axis path ---
    in_c2, out_c2, ksz2, st2, gr2 = 8, 8, 5, 1, 4
    kd, ke, kf, key = jax.random.split(key, 4)
    x2 = jax.random.normal(kd, (batch, in_c2, length), dtype=jnp.float32)
    w2 = 0.1 * jax.random.normal(ke, (out_c2, in_c2 // gr2, ksz2), dtype=jnp.float32)
    b2 = 0.1 * jax.random.normal(kf, (out_c2,), dtype=jnp.float32)
    out2 = jax.block_until_ready(conv1d_pad_same(
        x2, w2, b2, stride=st2, groups=gr2, max_fused_contraction=0))
    ref2 = reference(x2, w2, b2, st2, gr2)
    assert jnp.allclose(out2, ref2, atol=1e-5, rtol=1e-5), "grouped path mismatch"

    # --- config 3: kernel smaller than stride (unused phases trimmed) ---
    in_c3, out_c3, ksz3, st3 = 4, 6, 2, 3
    kg, kh, ki, key = jax.random.split(key, 4)
    x3 = jax.random.normal(kg, (batch, in_c3, length), dtype=jnp.float32)
    w3 = 0.1 * jax.random.normal(kh, (out_c3, in_c3, ksz3), dtype=jnp.float32)
    b3 = 0.1 * jax.random.normal(ki, (out_c3,), dtype=jnp.float32)
    out3 = jax.block_until_ready(conv1d_pad_same(x3, w3, b3, stride=st3, groups=1))
    ref3 = reference(x3, w3, b3, st3, 1)
    assert jnp.allclose(out3, ref3, atol=1e-5, rtol=1e-5), "K<stride path mismatch"

    # --- config 4: multi-tile packed L axis, halo crossing exercised (tile=128)
    in_c4, out_c4, ksz4, st4, len4 = 4, 4, 5, 1, 80
    kj, kk_, kl, key = jax.random.split(key, 4)
    x4 = jax.random.normal(kj, (batch, in_c4, len4), dtype=jnp.float32)
    w4 = 0.1 * jax.random.normal(kk_, (out_c4, in_c4, ksz4), dtype=jnp.float32)
    b4 = 0.1 * jax.random.normal(kl, (out_c4,), dtype=jnp.float32)
    out4 = jax.block_until_ready(conv1d_pad_same(
        x4, w4, b4, stride=st4, groups=1, tile_cap=128))
    ref4 = reference(x4, w4, b4, st4, 1)
    assert jnp.allclose(out4, ref4, atol=1e-5, rtol=1e-5), "halo path mismatch"

    print("KERNEL_OK")
</pallas_src>

<mosaic_0001>
module attributes {stable_mosaic.version = 11 : i64} {
  func.func @_conv1d_same_kernel(%arg0: i32, %arg1: memref<1x2x8x128xf32, #tpu.memory_space<vmem>>, %arg2: memref<1x2x8x128xf32, #tpu.memory_space<vmem>>, %arg3: memref<1x3x16x8xf32, #tpu.memory_space<vmem>>, %arg4: memref<1x16x128xf32, #tpu.memory_space<vmem>>, %arg5: memref<1x16x128xf32, #tpu.memory_space<vmem>>) attributes {dimension_semantics = [#tpu.dimension_semantics<parallel>], iteration_bounds = array<i64: 1>, scalar_prefetch = 0 : i64, scratch_operands = 0 : i64, tpu.core_type = #tpu.core_type<tc>, window_params = [{transform_indices = @transform_0, window_bounds = array<i64: 1, 2, 8, 128>}, {transform_indices = @transform_1, window_bounds = array<i64: 1, 2, 8, 128>}, {pipeline_mode = #tpu.pipeline_mode<synchronous>, transform_indices = @transform_2, window_bounds = array<i64: 1, 3, 16, 8>}, {pipeline_mode = #tpu.pipeline_mode<synchronous>, transform_indices = @transform_3, window_bounds = array<i64: 1, 16, 128>}, {transform_indices = @transform_4, window_bounds = array<i64: 1, 16, 128>}]} {
    %c0 = arith.constant 0 : index
    %c0_0 = arith.constant 0 : index
    %c0_1 = arith.constant 0 : index
    %c0_2 = arith.constant 0 : index
    %0 = vector.load %arg1[%c0, %c0_0, %c0_1, %c0_2] : memref<1x2x8x128xf32, #tpu.memory_space<vmem>>, vector<1x2x8x128xf32>
    %1 = vector.shape_cast %0 : vector<1x2x8x128xf32> to vector<2x8x128xf32>
    %c0_3 = arith.constant 0 : index
    %c0_4 = arith.constant 0 : index
    %c0_5 = arith.constant 0 : index
    %c0_6 = arith.constant 0 : index
    %2 = vector.load %arg2[%c0_3, %c0_4, %c0_5, %c0_6] : memref<1x2x8x128xf32, #tpu.memory_space<vmem>>, vector<1x2x8x128xf32>
    %3 = vector.shape_cast %2 : vector<1x2x8x128xf32> to vector<2x8x128xf32>
    %4 = tpu.concatenate %1, %3 in 2 : vector<2x8x128xf32>, vector<2x8x128xf32> -> vector<2x8x256xf32>
    %cst = arith.constant 0.000000e+00 : f32
    %5 = vector.broadcast %cst : f32 to vector<16x128xf32>
    %6 = vector.extract_strided_slice %4 {offsets = [0, 0, 0], sizes = [1, 8, 128], strides = [1, 1, 1]} : vector<2x8x256xf32> to vector<1x8x128xf32>
    %7 = vector.shape_cast %6 : vector<1x8x128xf32> to vector<8x128xf32>
    %c0_7 = arith.constant 0 : index
    %c0_8 = arith.constant 0 : index
    %c0_9 = arith.constant 0 : index
    %c0_10 = arith.constant 0 : index
    %8 = vector.load %arg3[%c0_7, %c0_8, %c0_9, %c0_10] : memref<1x3x16x8xf32, #tpu.memory_space<vmem>>, vector<1x1x16x8xf32>
    %9 = vector.shape_cast %8 : vector<1x1x16x8xf32> to vector<16x8xf32>
    %cst_11 = arith.constant dense<0.000000e+00> : vector<16x128xf32>
    %10 = tpu.matmul %9, %7, %cst_11 {dimension_numbers = #tpu.dot_dimension_numbers<[1], [0], [0], [1], [0, 0, 1, 1], [], []>} : vector<16x8xf32>, vector<8x128xf32>, vector<16x128xf32> -> vector<16x128xf32>
    %11 = arith.addf %5, %10 : vector<16x128xf32>
    %12 = vector.extract_strided_slice %4 {offsets = [1, 0, 0], sizes = [1, 8, 128], strides = [1, 1, 1]} : vector<2x8x256xf32> to vector<1x8x128xf32>
    %13 = vector.shape_cast %12 : vector<1x8x128xf32> to vector<8x128xf32>
    %c0_12 = arith.constant 0 : index
    %c1 = arith.constant 1 : index
    %c0_13 = arith.constant 0 : index
    %c0_14 = arith.constant 0 : index
    %14 = vector.load %arg3[%c0_12, %c1, %c0_13, %c0_14] : memref<1x3x16x8xf32, #tpu.memory_space<vmem>>, vector<1x1x16x8xf32>
    %15 = vector.shape_cast %14 : vector<1x1x16x8xf32> to vector<16x8xf32>
    %cst_15 = arith.constant dense<0.000000e+00> : vector<16x128xf32>
    %16 = tpu.matmul %15, %13, %cst_15 {dimension_numbers = #tpu.dot_dimension_numbers<[1], [0], [0], [1], [0, 0, 1, 1], [], []>} : vector<16x8xf32>, vector<8x128xf32>, vector<16x128xf32> -> vector<16x128xf32>
    %17 = arith.addf %11, %16 : vector<16x128xf32>
    %18 = vector.extract_strided_slice %4 {offsets = [0, 0, 1], sizes = [1, 8, 128], strides = [1, 1, 1]} : vector<2x8x256xf32> to vector<1x8x128xf32>
    %19 = vector.shape_cast %18 : vector<1x8x128xf32> to vector<8x128xf32>
    %c0_16 = arith.constant 0 : index
    %c2 = arith.constant 2 : index
    %c0_17 = arith.constant 0 : index
    %c0_18 = arith.constant 0 : index
    %20 = vector.load %arg3[%c0_16, %c2, %c0_17, %c0_18] : memref<1x3x16x8xf32, #tpu.memory_space<vmem>>, vector<1x1x16x8xf32>
    %21 = vector.shape_cast %20 : vector<1x1x16x8xf32> to vector<16x8xf32>
    %cst_19 = arith.constant dense<0.000000e+00> : vector<16x128xf32>
    %22 = tpu.matmul %21, %19, %cst_19 {dimension_numbers = #tpu.dot_dimension_numbers<[1], [0], [0], [1], [0, 0, 1, 1], [], []>} : vector<16x8xf32>, vector<8x128xf32>, vector<16x128xf32> -> vector<16x128xf32>
    %23 = arith.addf %17, %22 : vector<16x128xf32>
    %c0_20 = arith.constant 0 : index
    %c0_21 = arith.constant 0 : index
    %c0_22 = arith.constant 0 : index
    %24 = vector.load %arg4[%c0_20, %c0_21, %c0_22] : memref<1x16x128xf32, #tpu.memory_space<vmem>>, vector<1x16x128xf32>
    %25 = vector.shape_cast %24 : vector<1x16x128xf32> to vector<16x128xf32>
    %26 = vector.extract_strided_slice %25 {offsets = [0, 0], sizes = [16, 1], strides = [1, 1]} : vector<16x128xf32> to vector<16x1xf32>
    %27 = vector.broadcast %26 : vector<16x1xf32> to vector<16x128xf32>
    %28 = arith.addf %23, %27 : vector<16x128xf32>
    %c0_23 = arith.constant 0 : index
    %c0_24 = arith.constant 0 : index
    %c0_25 = arith.constant 0 : index
    %29 = vector.load %arg5[%c0_23, %c0_24, %c0_25] : memref<1x16x128xf32, #tpu.memory_space<vmem>>, vector<1x16x128xf32>
    %30 = vector.shape_cast %29 : vector<1x16x128xf32> to vector<16x128xf32>
    %31 = vector.shape_cast %28 : vector<16x128xf32> to vector<1x16x128xf32>
    tpu.vector_store %arg5[%c0_23, %c0_24, %c0_25], %31 {strides = array<i32>} : memref<1x16x128xf32, #tpu.memory_space<vmem>>, vector<1x16x128xf32>,
    return
  }
  func.func @transform_0(%arg0: i32) -> (i32, i32, i32, i32) {
    %c0_i32 = arith.constant 0 : i32
    %c0_i32_0 = arith.constant 0 : i32
    %c0_i32_1 = arith.constant 0 : i32
    %c0_i32_2 = arith.constant 0 : i32
    return %c0_i32, %c0_i32_0, %c0_i32_1, %arg0 : i32, i32, i32, i32
  }
  func.func @transform_1(%arg0: i32) -> (i32, i32, i32, i32) {
    %c1_i32 = arith.constant 1 : i32
    %0 = arith.addi %arg0, %c1_i32 : i32
    %c1_i32_0 = arith.constant 1 : i32
    %1 = arith.muli %0, %c1_i32_0 : i32
    %c0_i32 = arith.constant 0 : i32
    %c0_i32_1 = arith.constant 0 : i32
    %c0_i32_2 = arith.constant 0 : i32
    %c0_i32_3 = arith.constant 0 : i32
    return %c0_i32, %c0_i32_1, %c0_i32_2, %1 : i32, i32, i32, i32
  }
  func.func @transform_2(%arg0: i32) -> (i32, i32, i32, i32) {
    %c0_i32 = arith.constant 0 : i32
    %c0_i32_0 = arith.constant 0 : i32
    %c0_i32_1 = arith.constant 0 : i32
    %c0_i32_2 = arith.constant 0 : i32
    %c0_i32_3 = arith.constant 0 : i32
    return %c0_i32, %c0_i32_0, %c0_i32_1, %c0_i32_2 : i32, i32, i32, i32
  }
  func.func @transform_3(%arg0: i32) -> (i32, i32, i32) {
    %c0_i32 = arith.constant 0 : i32
    %c0_i32_0 = arith.constant 0 : i32
    %c0_i32_1 = arith.constant 0 : i32
    %c0_i32_2 = arith.constant 0 : i32
    return %c0_i32, %c0_i32_0, %c0_i32_1 : i32, i32, i32
  }
  func.func @transform_4(%arg0: i32) -> (i32, i32, i32) {
    %c0_i32 = arith.constant 0 : i32
    %c0_i32_0 = arith.constant 0 : i32
    %c0_i32_1 = arith.constant 0 : i32
    return %c0_i32, %c0_i32_0, %arg0 : i32, i32, i32
  }
}

</mosaic_0001>

<bundles_post_ra>
// kernel: tpu_custom_call.1
= control target key start
LH: loop header
LB: loop body
LE: loop exit
PB: predicated region body
PF: predicated region fallthrough
CT: control target
= control target key end

     0   :  { %vm106_vm0 = vcmask 64512   ;;  %s476_s19 = smov 127   ;;  %s557_s0 = inlined_call_operand.vmem [shape: f32[1,2,8,256], index: 0, kind: input, shape index: {}]   ;;  %s558_s1 = inlined_call_operand.vmem [shape: f32[1,2,8,256], index: 1, kind: input, shape index: {}]   ;;  %s559_s2 = inlined_call_operand.vmem [shape: f32[1,3,16,8], index: 2, kind: input, shape index: {}]   ;;  %s560_s3 = inlined_call_operand.vmem [shape: f32[1,16,128], index: 3, kind: input, shape index: {}]   ;;  %s561_s4 = inlined_call_operand.hbm [shape: f32[1,16,128], index: 4, kind: output, shape index: {}]  }
   0x1   :  { %v41_v0 = vld [vmem:[%s557_s0] sm:$0xff]  ;;  %v102_v2 = vld [vmem:[%s559_s2 + $0x8] sm:$0xff]  ;;  %v43_v3 = vld [vmem:[%s557_s0 + $0x10] sm:$0xff] }
   0x2   :  { %v101_v1 = vld [vmem:[%s559_s2] sm:$0xff]  ;;  %274 = vrot.lane.b32.xlu0 %v41_v0, %s476_s19  ;;  %431 = vmatprep.subr.mxu0 %v41_v0  ;;  %v407_v4 = vld [vmem:[%s559_s2 + $0x10] sm:$0xff]  ;;  %v405_v5 = vld [vmem:[%s558_s1 + $0x8] sm:$0xff] }
   0x3   :  { %432 = vmatpush3.msra.mxu0 %v41_v0  ;;  %433 = vmatprep.mubr.msk.f32.mxu0 %vm106_vm0, %v101_v1  ;;  %v413_v6 = vld [vmem:[%s559_s2 + $0x20] sm:$0xff]  ;;  %v408_v7 = vld [vmem:[%s559_s2 + $0x18] sm:$0xff] }
   0x4   :  { %434 = vmatmul.mubr.msk.f32.vlgmr.msra.gmra.mrb[0].mxu0 %vm106_vm0, %v102_v2  ;;  %426 = vmatprep.subr.mxu1 %v43_v3 }
   0x5   :  { %9 = vsyncpa [#allocation5], 0  ;;  %427 = vmatpush3.msra.mxu1 %v43_v3  ;;  %428 = vmatprep.mubr.msk.f32.mxu1 %vm106_vm0, %v407_v4  ;;  %v364_v8 = vld [vmem:[%s560_s3] sm:$0xff]  ;;  %v477_v9 = vmov 0   ;;  %v365_v10 = vld [vmem:[%s560_s3 + $0x8] sm:$0xff]  ;;  %vm278_vm1 = vcmask 1039360  }
   0x6   :  { %276 = vrot.lane.b32.xlu0 %v405_v5, %s476_s19  ;;  %438 = vmatprep.mubr.msk.f32.mxu0 %vm106_vm0, %v413_v6  ;;  %v414_v14 = vld [vmem:[%s559_s2 + $0x28] sm:$0xff]  ;;  %s478_s10 = smov [#allocation4]  }
   0x7   :  { %429 = vmatmul.mubr.msk.f32.vlgmr.msra.gmra.mrb[0].mxu1 %vm106_vm0, %v408_v7  ;;  %450 = vset.pattern.permute.xlu1 %v477_v9  ;;  %s385_s11 = sshll.u32 %s478_s10, 4  ;;  %s386_s11 = int_to_ptr.vmem [resolvable:$true] %s385_s11 }
   0x8   :  { %368 = vperm.xlu1 %450, %v364_v8   ;;  %451 = vset.pattern.permute.xlu0 %v477_v9  ;;  %s452_s2 = scalar_lea.vmem %s386_s11, 256  ;;  %p457_p1 = scmp.lt.s32.totalorder %s386_s11, %s386_s11 }
   0x9   :  { %p453_p0 = scmp.ne.s32.totalorder %s386_s11, %s452_s2  ;;  %p458_p2 = scmp.lt.s32.totalorder %s452_s2, %s452_s2 }
   0xb   :  { %p459_p3 = por %p458_p2, %p457_p1 }
   0xc   :  { %373 = vperm.xlu1 %450, %v365_v10  }
   0xd   :  { %p460_p4 = pnand %p459_p3, %p453_p0 }
  0x74   :  { %v275_v11 = vpop.permute.xlu0 %274 }
  0x78   :  { %v277_v12 = vpop.permute.xlu0 %276 }
  0x79   :  { %v279_v13 = vsel %vm278_vm1, %v275_v11, %v277_v12 }
  0x7a   :  { %436 = vmatprep.subr.mxu0 %v279_v13 }
  0x7b   :  { %437 = vmatpush3.msra.mxu0 %v279_v13 }
  0x7c   :  { %439 = vmatmul.mubr.msk.f32.vlgmr.msra.gmra.mrb[0].mxu0 %vm106_vm0, %v414_v14 }
  0x87   :  { %v369_v17 = vpop.permute.xlu1 %368 }
  0x8b   :  { %v374_v22 = vpop.permute.xlu1 %373 }
  0xda   :  { %v430_v15 = vpop.f32.mrb[0].mxu1 }
  0xdb   :  { %v179_v16 = vpop.f32.mrb[1].mxu1 }
 0x14f   :  { %v440_v18 = vpop.f32.mrb[0].mxu0 }
 0x150   :  { %v441_v19 = vadd.f32 %v440_v18, %v430_v15  ;;  %v353_v20 = vpop.f32.mrb[1].mxu0 }
 0x151   :  { %v442_v21 = vadd.f32 %v353_v20, %v179_v16 }
 0x152   :  { %v377_v23 = vadd.f32 %v441_v19, %v374_v22 }
 0x153   :  { %v376_v24 = vadd.f32 %v442_v21, %v369_v17 }
 0x154   :  { %379 = vst [vmem:[#allocation4 + $0x8] sm:$0xff] %v377_v23 }
 0x155   :  { %378 = vst [vmem:[#allocation4] sm:$0xff] %v376_v24 }
 0x156   :  { %463 = shalt.err (!%p460_p4)
}
 0x157   :  { %s464_s13 = scalar_lea.hbm %s561_s4, 256 }
 0x158   :  { %p465_p5 = scmp.ne.s32.totalorder %s561_s4, %s464_s13  ;;  %p468_p6 = scmp.lt.u32.totalorder %s464_s13, %s561_s4 }
 0x15a   :  { %p470_p7 = pnand %p468_p6, %p465_p5 }
 0x15c   :  { %473 = shalt.err (!%p470_p7)
}
 0x15d   :  { %s479_s18 = smov 128   ;;  %s480_s19 = smov 8  }
 0x15e   :  { %391 = dma.vmem_to_hbm [thread:$0]  %s386_s11, 256, %s561_s4, [#allocation5], %s479_s18, %s479_s18, %s480_s19  }
 0x15f   :  { %474 = dma.done.wait [#allocation5], 256  }
 0x160   :  { %475 = vsyncadd [#allocation5], 4294967040 }
 0x161   :  { %395 = vsyncpa [#allocation5], 1 }

</bundles_post_ra>
